<compile_context>
chip_gen: v7x
topology: tpu7x:2x2x1
jax: 0.10.0
libtpu: 0.0.40
codegen_flags: <defaults>
</compile_context>

<pallas_src>
import functools

import jax
import jax.numpy as jnp
from jax import lax
from jax.experimental import pallas as pl
from jax.experimental.pallas import tpu as pltpu


def _round_up(v, m):
    return (v + m - 1) // m * m


def _cdiv(a, b):
    return (a + b - 1) // b


def _tensorcores_per_device():
    """Best-effort TensorCores-per-device (v7x: 2; v5e/v6e: 1)."""
    try:
        kind = jax.devices()[0].device_kind.lower()
    except Exception:
        return 2
    single_tc_tags = ("v5e", "v5 lite", "v5lite", "v6e", "v6 lite", "v6lite")
    if any(t in kind for t in single_tc_tags):
        return 1
    return 2


def _make_tiled_kernel(*, has_bias, use_acc_scratch, k_rem):
    """Output-stationary GEMM kernel over grid (M_tiles, N_tiles, K_tiles).

    Ref layout (per grid step):
      x_ref: [tm, tk]   input tile
      w_ref: [tn, tk]   weight tile in PyTorch [N, K] layout (no HBM transpose)
      b_ref: [1, tn]    bias slice (only if has_bias)
      o_ref: [tm, tn]   output tile, resident across the K grid axis
      acc_ref: [tm, tn] f32 scratch (only for non-f32 outputs)
    """

    def kernel(*refs):
        if has_bias:
            x_ref, w_ref, b_ref = refs[:3]
            rest = refs[3:]
        else:
            x_ref, w_ref = refs[:2]
            b_ref = None
            rest = refs[2:]
        o_ref = rest[0]
        acc_ref = rest[1] if use_acc_scratch else o_ref

        k = pl.program_id(2)
        nk = pl.num_programs(2)

        @pl.when(k == 0)
        def _():
            acc_ref[...] = jnp.zeros_like(acc_ref)

        def accumulate(xv, wv):
            # x @ W.T == contract the last dim of both operands ("NT" matmul).
            acc_ref[...] += lax.dot_general(
                xv, wv,
                dimension_numbers=(((1,), (1,)), ((), ())),
                preferred_element_type=jnp.float32,
            )

        if k_rem:
            # K does not divide tk: the last K step's block extends past the
            # array and its OOB contents are undefined.  Mask BOTH operands
            # (masking only one is insufficient: 0 * NaN = NaN).  The mask is
            # a cheap VPU `where` executed only on the last K step.
            is_last_k = k == nk - 1

            @pl.when(jnp.logical_not(is_last_k))
            def _():
                accumulate(x_ref[...], w_ref[...])

            @pl.when(is_last_k)
            def _():
                x_keep = lax.broadcasted_iota(jnp.int32, x_ref.shape, 1) < k_rem
                w_keep = lax.broadcasted_iota(jnp.int32, w_ref.shape, 1) < k_rem
                accumulate(jnp.where(x_keep, x_ref[...], 0),
                           jnp.where(w_keep, w_ref[...], 0))
        else:
            accumulate(x_ref[...], w_ref[...])

        if has_bias or use_acc_scratch:
            # Bias added exactly once, after the full K reduction (matches
            # TiledLinear, which gives bias only to the last in-split).
            @pl.when(k == nk - 1)
            def _():
                res = acc_ref[...]
                if has_bias:
                    res = res + b_ref[...].astype(jnp.float32)
                o_ref[...] = res.astype(o_ref.dtype)

    return kernel


def _make_resident_kernel(*, has_bias):
    """Fast path: whole weight resident in VMEM, grid only over M tiles."""

    def kernel(*refs):
        if has_bias:
            x_ref, w_ref, b_ref, o_ref = refs
        else:
            x_ref, w_ref, o_ref = refs
            b_ref = None
        acc = lax.dot_general(
            x_ref[...], w_ref[...],
            dimension_numbers=(((1,), (1,)), ((), ())),
            preferred_element_type=jnp.float32,
        )
        if has_bias:
            acc = acc + b_ref[...].astype(jnp.float32)
        o_ref[...] = acc.astype(o_ref.dtype)

    return kernel


@functools.partial(
    jax.jit,
    static_argnames=("in_splits", "out_splits", "tm", "tn", "tk", "compute_dtype"),
)
def tiled_linear(x, weight, bias=None, *, in_splits=1, out_splits=1,
                 tm=None, tn=None, tk=None, compute_dtype=None):
    """Pallas TiledLinear forward (combine_out_splits=True path).

    x:      [..., in_features]
    weight: [out_features, in_features]   (PyTorch nn.Linear layout)
    bias:   [out_features] or None
    Returns [..., out_features]  (dtype of x).
    """
    in_features = x.shape[-1]
    out_features = weight.shape[0]
    assert weight.shape == (out_features, in_features)
    # TiledLinear validity checks; the split counts do not change the combined
    # math, so the hardware tiles below are chosen independently of them.
    assert 1 <= in_splits <= in_features, "in_splits must be in [1, in_features]"
    assert 1 <= out_splits <= out_features, "out_splits must be in [1, out_features]"

    out_dtype = x.dtype
    if compute_dtype is not None:   # optional, accuracy-permitting bf16 compute
        x = x.astype(compute_dtype)
    if weight.dtype != x.dtype:
        weight = weight.astype(x.dtype)

    lead_shape = x.shape[:-1]
    M = 1
    for d in lead_shape:
        M *= d
    x2d = x.reshape(M, in_features)

    has_bias = bias is not None
    b2d = bias.reshape(1, out_features) if has_bias else None

    K, N = in_features, out_features
    itemsize = jnp.dtype(x.dtype).itemsize
    out_itemsize = jnp.dtype(out_dtype).itemsize
    sub = 8 if itemsize == 4 else 16          # second-to-last dim granularity
    multicore = _tensorcores_per_device() > 1

    # ------------------------------------------------------------------
    # Fast path: small, 128-aligned weight kept resident in VMEM for the
    # whole call (constant index_map => DMA'd once, no per-M-tile re-read).
    # ------------------------------------------------------------------
    use_fast = (tm is None and tn is None and tk is None
                and K % 128 == 0 and N % 128 == 0)
    if use_fast:
        tm_f = min(512, _round_up(M, sub))
        if multicore and _cdiv(M, tm_f) < 2 and M > sub:
            tm_f = _round_up(_cdiv(M, 2), sub)   # give both v7x TCs work
        need = (2 * N * K * itemsize             # weight (2 buffers allocated)
                + 2 * tm_f * K * itemsize        # x tiles, double-buffered
                + 2 * tm_f * N * out_itemsize    # out tiles, double-buffered
                + (2 * 8 * N * itemsize if has_bias else 0))
        use_fast = need <= 28 * 1024 * 1024      # safe on v7x's 64 MiB VMEM

    if use_fast:
        kernel = _make_resident_kernel(has_bias=has_bias)
        in_specs = [
            pl.BlockSpec((tm_f, K), lambda m: (m, 0)),   # x rows tile
            pl.BlockSpec((N, K), lambda m: (0, 0)),      # full weight, resident
        ]
        operands = [x2d, weight]
        if has_bias:
            in_specs.append(pl.BlockSpec((1, N), lambda m: (0, 0)))
            operands.append(b2d)
        vmem_limit = int(min(48 << 20, max(32 << 20, need + (16 << 20))))
        out = pl.pallas_call(
            kernel,
            out_shape=jax.ShapeDtypeStruct((M, N), out_dtype),
            grid_spec=pltpu.PrefetchScalarGridSpec(
                num_scalar_prefetch=0,
                grid=(_cdiv(M, tm_f),),
                in_specs=in_specs,
                out_specs=pl.BlockSpec((tm_f, N), lambda m: (m, 0)),
            ),
            compiler_params=pltpu.CompilerParams(
                dimension_semantics=("parallel",),
                vmem_limit_bytes=vmem_limit,
            ),
        )(*operands)
        return out.reshape(*lead_shape, N)

    # ------------------------------------------------------------------
    # General path: output-stationary tiles, K innermost (reduction).
    # ------------------------------------------------------------------
    tm_auto, tn_auto = tm is None, tn is None
    if tm is None:
        tm = min(512, _round_up(M, sub))
    if tk is None:
        tk = min(512, _round_up(K, 128))
    if tn is None:
        tn = min(512, _round_up(N, 128))

    # v7x: guarantee >= 2 programs on the parallel axes so both TCs get work.
    if multicore:
        while _cdiv(M, tm) * _cdiv(N, tn) < 2:
            if tn_auto and tn > 128:
                tn //= 2
            elif tm_auto and tm > sub:
                tm = max(sub, _round_up(tm // 2, sub))
            else:
                break

    nk = _cdiv(K, tk)
    k_rem = K % tk            # 0 => K divides tk evenly, no tail mask needed

    use_acc = jnp.dtype(out_dtype) != jnp.float32
    kernel = _make_tiled_kernel(has_bias=has_bias, use_acc_scratch=use_acc,
                                k_rem=k_rem)

    in_specs = [
        pl.BlockSpec((tm, tk), lambda m, n, k: (m, k)),   # x tile
        pl.BlockSpec((tn, tk), lambda m, n, k: (n, k)),   # weight [N,K] tile
    ]
    operands = [x2d, weight]
    if has_bias:
        in_specs.append(pl.BlockSpec((1, tn), lambda m, n, k: (0, n)))
        operands.append(b2d)

    scratch = [pltpu.VMEM((tm, tn), jnp.float32)] if use_acc else []

    need = (2 * (tm * tk + tn * tk) * itemsize      # x + W tiles, double-buffered
            + 2 * tm * tn * out_itemsize            # output block, double-buffered
            + (2 * 8 * tn * itemsize if has_bias else 0)
            + (tm * tn * 4 if use_acc else 0))      # f32 accumulator scratch
    vmem_limit = int(min(48 << 20, max(32 << 20, 2 * need + (8 << 20))))

    out = pl.pallas_call(
        kernel,
        out_shape=jax.ShapeDtypeStruct((M, N), out_dtype),
        grid_spec=pltpu.PrefetchScalarGridSpec(
            num_scalar_prefetch=0,
            grid=(_cdiv(M, tm), _cdiv(N, tn), nk),   # K innermost (reduction)
            in_specs=in_specs,
            out_specs=pl.BlockSpec((tm, tn), lambda m, n, k: (m, n)),
            scratch_shapes=scratch,
        ),
        compiler_params=pltpu.CompilerParams(
            dimension_semantics=("parallel", "parallel", "arbitrary"),
            vmem_limit_bytes=vmem_limit,
        ),
    )(*operands)

    return out.reshape(*lead_shape, N)


if __name__ == "__main__":
    key = jax.random.PRNGKey(0)
    keys = jax.random.split(key, 12)
    HI = lax.Precision.HIGHEST

    # --- case 1: aligned small layer → weight-resident fast path ------------
    batch, seq, in_f, out_f = 2, 8, 256, 256
    x1 = jax.random.normal(keys[0], (batch, seq, in_f), dtype=jnp.float32)
    w1 = jax.random.normal(keys[1], (out_f, in_f), dtype=jnp.float32) * 0.02
    b1 = jax.random.normal(keys[2], (out_f,), dtype=jnp.float32) * 0.1
    y1 = jax.block_until_ready(tiled_linear(x1, w1, b1, in_splits=2, out_splits=2))
    y1_ref = jnp.einsum("bsk,nk->bsn", x1, w1, precision=HI) + b1
    assert y1.shape == (batch, seq, out_f)
    assert jnp.allclose(y1, y1_ref, atol=1e-4, rtol=1e-4)

    # --- case 2: ragged shapes → general path, K-tail mask + M/N edge blocks
    b2, s2, k2, n2 = 3, 5, 96, 200
    x2 = jax.random.normal(keys[3], (b2, s2, k2), dtype=jnp.float32)
    w2 = jax.random.normal(keys[4], (n2, k2), dtype=jnp.float32) * 0.02
    bi2 = jax.random.normal(keys[5], (n2,), dtype=jnp.float32) * 0.1
    y2 = jax.block_until_ready(tiled_linear(x2, w2, bi2, in_splits=3, out_splits=2))
    y2_ref = jnp.einsum("bsk,nk->bsn", x2, w2, precision=HI) + bi2
    assert y2.shape == (b2, s2, n2)
    assert jnp.allclose(y2, y2_ref, atol=1e-4, rtol=1e-4)

    # --- case 3: K > tk and K % tk != 0, no bias → multi-step K + no-bias path
    b3, s3, k3, n3 = 2, 8, 600, 384
    x3 = jax.random.normal(keys[6], (b3, s3, k3), dtype=jnp.float32)
    w3 = jax.random.normal(keys[7], (n3, k3), dtype=jnp.float32) * 0.02
    y3 = jax.block_until_ready(tiled_linear(x3, w3, None, in_splits=4, out_splits=3))
    y3_ref = jnp.einsum("bsk,nk->bsn", x3, w3, precision=HI)
    assert y3.shape == (b3, s3, n3)
    assert jnp.allclose(y3, y3_ref, atol=2e-4, rtol=2e-4)

    # --- case 4: bf16 inputs → f32-accumulator-scratch path ------------------
    x4 = jax.random.normal(keys[8], (b3, s3, k3), dtype=jnp.float32).astype(jnp.bfloat16)
    w4 = (jax.random.normal(keys[9], (n3, k3), dtype=jnp.float32) * 0.02).astype(jnp.bfloat16)
    b4 = (jax.random.normal(keys[10], (n3,), dtype=jnp.float32) * 0.1).astype(jnp.bfloat16)
    y4 = jax.block_until_ready(tiled_linear(x4, w4, b4, in_splits=2, out_splits=2))
    y4_ref = (jnp.einsum("bsk,nk->bsn", x4.astype(jnp.float32),
                         w4.astype(jnp.float32), precision=HI)
              + b4.astype(jnp.float32))
    assert y4.dtype == jnp.bfloat16 and y4.shape == (b3, s3, n3)
    assert jnp.allclose(y4.astype(jnp.float32), y4_ref, atol=3e-2, rtol=3e-2)

    # TODO(synk): combine_out_splits=False / input_is_already_split list-based
    # interfaces are Python-side plumbing in the original module and are not
    # reproduced here; the combined-output path above covers the math.
    print("KERNEL_OK")
</pallas_src>

<mosaic_0001>
module attributes {stable_mosaic.version = 11 : i64} {
  func.func @kernel(%arg0: i32, %arg1: memref<8x256xf32, #tpu.memory_space<vmem>>, %arg2: memref<256x256xf32, #tpu.memory_space<vmem>>, %arg3: memref<1x256xf32, #tpu.memory_space<vmem>>, %arg4: memref<8x256xf32, #tpu.memory_space<vmem>>) attributes {dimension_semantics = [#tpu.dimension_semantics<parallel>], iteration_bounds = array<i64: 2>, scalar_prefetch = 0 : i64, scratch_operands = 0 : i64, tpu.core_type = #tpu.core_type<tc>, window_params = [{transform_indices = @transform_0, window_bounds = array<i64: 8, 256>}, {pipeline_mode = #tpu.pipeline_mode<synchronous>, transform_indices = @transform_1, window_bounds = array<i64: 256, 256>}, {pipeline_mode = #tpu.pipeline_mode<synchronous>, transform_indices = @transform_2, window_bounds = array<i64: 1, 256>}, {transform_indices = @transform_3, window_bounds = array<i64: 8, 256>}]} {
    %c0 = arith.constant 0 : index
    %c0_0 = arith.constant 0 : index
    %0 = vector.load %arg1[%c0, %c0_0] : memref<8x256xf32, #tpu.memory_space<vmem>>, vector<8x256xf32>
    %c0_1 = arith.constant 0 : index
    %c0_2 = arith.constant 0 : index
    %1 = vector.load %arg2[%c0_1, %c0_2] : memref<256x256xf32, #tpu.memory_space<vmem>>, vector<256x256xf32>
    %cst = arith.constant dense<0.000000e+00> : vector<8x256xf32>
    %2 = tpu.matmul %0, %1, %cst {dimension_numbers = #tpu.dot_dimension_numbers<[1], [1], [0], [0], [0, 0, 1, 0], [], []>} : vector<8x256xf32>, vector<256x256xf32>, vector<8x256xf32> -> vector<8x256xf32>
    %c0_3 = arith.constant 0 : index
    %c0_4 = arith.constant 0 : index
    %3 = vector.load %arg3[%c0_3, %c0_4] : memref<1x256xf32, #tpu.memory_space<vmem>>, vector<1x256xf32>
    %4 = vector.broadcast %3 : vector<1x256xf32> to vector<8x256xf32>
    %5 = arith.addf %2, %4 : vector<8x256xf32>
    %c0_5 = arith.constant 0 : index
    %c0_6 = arith.constant 0 : index
    %6 = vector.load %arg4[%c0_5, %c0_6] : memref<8x256xf32, #tpu.memory_space<vmem>>, vector<8x256xf32>
    tpu.vector_store %arg4[%c0_5, %c0_6], %5 {strides = array<i32>} : memref<8x256xf32, #tpu.memory_space<vmem>>, vector<8x256xf32>,
    return
  }
  func.func @transform_0(%arg0: i32) -> (i32, i32) {
    %c0_i32 = arith.constant 0 : i32
    %c0_i32_0 = arith.constant 0 : i32
    return %arg0, %c0_i32 : i32, i32
  }
  func.func @transform_1(%arg0: i32) -> (i32, i32) {
    %c0_i32 = arith.constant 0 : i32
    %c0_i32_0 = arith.constant 0 : i32
    %c0_i32_1 = arith.constant 0 : i32
    return %c0_i32, %c0_i32_0 : i32, i32
  }
  func.func @transform_2(%arg0: i32) -> (i32, i32) {
    %c0_i32 = arith.constant 0 : i32
    %c0_i32_0 = arith.constant 0 : i32
    %c0_i32_1 = arith.constant 0 : i32
    return %c0_i32, %c0_i32_0 : i32, i32
  }
  func.func @transform_3(%arg0: i32) -> (i32, i32) {
    %c0_i32 = arith.constant 0 : i32
    %c0_i32_0 = arith.constant 0 : i32
    return %arg0, %c0_i32 : i32, i32
  }
}

</mosaic_0001>

<bundles_post_ra>
// kernel: tiled_linear.1
= control target key start
LH: loop header
LB: loop body
LE: loop exit
PB: predicated region body
PF: predicated region fallthrough
CT: control target
= control target key end

     0   :  { %8 = vsyncpa [#allocation3], 0  ;;  %s951_s0 = inlined_call_operand.hbm [shape: f32[16,256], index: 0, kind: input, shape index: {}]   ;;  %s952_s1 = inlined_call_operand.hbm [shape: f32[256,256], index: 1, kind: input, shape index: {}]   ;;  %s953_s2 = inlined_call_operand.vmem [shape: f32[1,256], index: 2, kind: input, shape index: {}]   ;;  %s954_s3 = inlined_call_operand.hbm [shape: f32[16,256], index: 3, kind: output, shape index: {}]  }
   0x1   :  { %10 = vsyncpa [#allocation3 + $0x1], 0 }
   0x2   :  { %11 = vsyncpa [#allocation6], 0 }
   0x3   :  { %12 = vsyncpa [#allocation4], 0 }
   0x4   :  { %14 = vsyncpa [#allocation4 + $0x1], 0  ;;  %s744_s12 = smov 0   ;;  %s746_s13 = smov 0  }
   0x5   :  { %s748_s14 = smov 0   ;;  %s750_s15 = smov 0  }
   0x6 LB: > { %s765_s16 = sadd.s32 4294967295, %s717_s15   ;;  %s448_s17 = sadd.s32 4294967294, %s717_s15   ;;  %s717_s15 = sphi %s750_s15, %s974_s15   ;;  %s713_s14 = sphi %s748_s14, %s973_s14   ;;  %s709_s13 = sphi %s746_s13, %s972_s13   ;;  %s705_s12 = sphi %s744_s12, %s971_s12  }
   0x7   : > { %p40_p0 = scmp.ne.s32.totalorder %s709_s13, %s705_s12  ;;  %p955_p1 = scmp.eq.s32.totalorder %s765_s16, 0 }
   0x8   : > { %p112_p3 = scmp.eq.s32.totalorder %s448_s17, 1  ;;  %p449_p5 = scmp.ge.s32.totalorder %s717_s15, 1 }
   0x9   : > { %p774_p4 = por %p955_p1, %p40_p0  ;;  %p119_p7 = scmp.lt.s32.totalorder %s717_s15, 3 }
   0xa   : > { %p779_p6 = por %p112_p3, %p40_p0  ;;  %s719_s21 = smov [#allocation5]  }
   0xb   : > { %s958_s18 = scalar_select %p774_p4, 1, 0 }
   0xc   : > { %s959_s19 = scalar_select %p779_p6, 1, 0 }
   0xd   : > { %p784_p8 = pnand %p449_p5, %p119_p7  ;;  %s131_s22 = sshll.u32 %s719_s21, 4  ;;  %s788_s22 = int_to_ptr.vmem [resolvable:$true] %s131_s22 }
   0xe   : > { %s800_s24 = sadd.s32 1, %s717_s15   ;;  %s27_s25 = sadd.s32 1, %s713_s14 }
   0xf   : > { %s960_s20 = scalar_select %p784_p8, 1, 0 }
  0x10   : > { %p538_p9 = pneg %p784_p8  ;;  %s24_s26 = ssub.s32 %s717_s15, %s800_s24 }
  0x11   : > { %s589_s29 = scalar_lea.hbm %s952_s1, 8192 }
  0x12   : > { %p795_p11 = pnand %p538_p9, %p955_p1  ;;  %p590_p12 = scmp.ne.s32.totalorder %s952_s1, %s589_s29 }
  0x13   : > { %p596_p5 = scmp.lt.u32.totalorder %s589_s29, %s952_s1 }
  0x14   : > { %p591_p13 = pneg %p795_p11 }
  0x16   : > { %p592_p0 = pnand %p591_p13, %p590_p12 }
  0x18   : > { %p593_p3 = pneg %p592_p0 }
  0x1a   : > { %p598_p7 = pnand %p596_p5, %p593_p3 }
  0x1c   : > { %601 = shalt.err (!%p598_p7)
}
  0x1d   : > { %s602_s7 = scalar_lea.vmem %s788_s22, 8192  ;;  %p610_p2 = scmp.lt.s32.totalorder %s788_s22, %s788_s22 }
  0x1e   : > { %p603_p9 = scmp.ne.s32.totalorder %s788_s22, %s602_s7  ;;  %p611_p6 = scmp.lt.s32.totalorder %s602_s7, %s602_s7 }
  0x20   : > { %p605_p10 = pnand %p603_p9, %p591_p13  ;;  %p612_p4 = por %p611_p6, %p610_p2 }
  0x22   : > { %p606_p1 = pneg %p605_p10 }
  0x24   : > { %p613_p8 = pnand %p612_p4, %p606_p1 }
  0x26   : > { %616 = shalt.err (!%p613_p8)
}
  0x27   : > { %s720_s8 = smov 256   ;;  %s721_s9 = smov 16  }
  0x28   : > { %541 = dma.hbm_to_vmem [thread:$0]  (!%p795_p11), %s952_s1, 8192, %s788_s22, [#allocation6], %s720_s8, %s720_s8, %s721_s9  }
  0x29   : > { %p25_p2 = scmp.eq.s32.totalorder %s24_s26, 0  ;;  %p34_p1 = scmp.ne.s32.totalorder %s713_s14, %s709_s13 }
  0x2a   : > { %p35_p4 = scmp.eq.s32.totalorder %s717_s15, 0  ;;  %p551_p6 = scmp.lt.s32.totalorder %s717_s15, 2 }
  0x2b   : > { %s831_s17 = scalar_select %p25_p2, %s713_s14, %s27_s25  }
  0x2c   : > { %p36_p8 = por %p35_p4, %p34_p1  ;;  %p962_p10 = scmp.eq.s32.totalorder %s765_s16, 1 }
  0x2d   : > { %s148_s27 = sand.u32 1, %s713_s14   ;;  %s464_s28 = sshll.u32 %s717_s15, 8 }
  0x2e   : > { %p835_p12 = por %p962_p10, %p34_p1  ;;  %s452_s29 = sshll.u32 %s148_s27, 4 }
  0x2f   : > { %s844_s4 = scalar_lea.hbm %s951_s0, %s464_s28  ;;  %s152_s22 = scalar_lea.vmem [#allocation2], %s452_s29 }
  0x30   : > { %s160_s25 = sshll.u32 %s152_s22, 4  ;;  %p846_p11 = pnand %p551_p6, %p36_p8  ;;  %s850_s25 = int_to_ptr.vmem [resolvable:$true] %s160_s25 }
  0x31   : > { %s149_s5 = scalar_lea.sflag [#allocation3], %s148_s27  ;;  %s617_s6 = scalar_lea.hbm %s844_s4, 256 }
  0x32   : > { %p618_p13 = scmp.ne.s32.totalorder %s844_s4, %s617_s6  ;;  %p619_p0 = pneg %p846_p11 }
  0x33   : > { %s622_s9 = scalar_lea.hbm %s951_s0, 512  ;;  %p623_p7 = scmp.lt.u32.totalorder %s844_s4, %s951_s0 }
  0x34   : > { %p620_p3 = pnand %p619_p0, %p618_p13  ;;  %p624_p9 = scmp.lt.u32.totalorder %s622_s9, %s617_s6 }
  0x35   : > { %p626_p1 = scmp.lt.u32.totalorder %s617_s6, %s844_s4 }
  0x36   : > { %p621_p5 = pneg %p620_p3  ;;  %p625_p2 = por %p624_p9, %p623_p7 }
  0x38   : > { %p627_p4 = por %p626_p1, %p625_p2 }
  0x3a   : > { %p628_p6 = pnand %p627_p4, %p621_p5 }
  0x3c   : > { %631 = shalt.err (!%p628_p6)
}
  0x3d   : > { %s632_s27 = scalar_lea.vmem %s850_s25, 256  ;;  %s722_s28 = smov [#allocation2]  }
  0x3e   : > { %p633_p8 = scmp.ne.s32.totalorder %s850_s25, %s632_s27  ;;  %s637_s29 = sshll.u32 %s722_s28, 4  ;;  %s638_s29 = int_to_ptr.vmem [resolvable:$false] %s637_s29 }
  0x3f   : > { %s639_s23 = scalar_lea.vmem %s638_s29, 512  ;;  %p640_p3 = scmp.lt.s32.totalorder %s850_s25, %s638_s29 }
  0x40   : > { %p635_p10 = pnand %p633_p8, %p619_p0  ;;  %p641_p7 = scmp.lt.s32.totalorder %s639_s23, %s632_s27 }
  0x42   : > { %p636_p13 = pneg %p635_p10  ;;  %p642_p9 = por %p641_p7, %p640_p3 }
  0x44   : > { %p643_p2 = pnand %p642_p9, %p636_p13 }
  0x46   : > { %646 = shalt.err (!%p643_p2)
}
  0x47   : > { %545 = dma.hbm_to_vmem [thread:$0]  (!%p846_p11), %s844_s4, 256, %s850_s25, %s149_s5  }
  0x48   : > { %p965_p5 = scmp.ne.s32.totalorder %s960_s20, 0 }
  0x49   : > { %s880_s30 = sand.u32 (!%p965_p5), 1, %s709_s13   ;;  %p966_p0 = scmp.ne.s32.totalorder (!%p965_p5), %s958_s18, 0 }
  0x4a   : > { %169 = sbr.rel (%p965_p5) target bundleno = 445 (0x1bd), region = 32  ;;  %s456_s22 = sshll.u32 (!%p965_p5), %s880_s30, 4 }
  0x4b   : > { %s172_s6 = scalar_lea.sflag (!%p965_p5), [#allocation3], %s880_s30  ;;  %s886_s7 = scalar_lea.vmem (!%p965_p5), [#allocation2], %s456_s22 }
  0x51   : > { %692 = dma.done.wait (%p966_p0), %s172_s6, 256  }
  0x52   : > { %694 = vsyncadd (%p966_p0), %s172_s6, 4294967040  ;;  %p967_p11 = scmp.eq.s32.totalorder %s765_s16, 0 }
  0x54   : > { %696 = dma.done.wait (%p967_p11), [#allocation6], 8192   ;;  %p968_p1 = pmov %p967_p11 }
  0x55   : > { %v205_v0 = vld [vmem:[#allocation5 + $0x8] sm:$0xff]  ;;  %v207_v1 = vld [vmem:[#allocation5 + $0x18] sm:$0xff]  ;;  %v204_v2 = vld [vmem:[#allocation5] sm:$0xff]  ;;  %s465_s4 = sshll.u32 %s765_s16, 8  ;;  %s201_s25 = scalar_lea.vmem [#allocation7], %s456_s22 }
  0x56   : > { %698 = vsyncadd (%p968_p1), [#allocation6], 4294959104  ;;  %v466_v3 = vpack.c.bf16 %v207_v1, %v205_v0  ;;  %v206_v4 = vld [vmem:[#allocation5 + $0x10] sm:$0xff]  ;;  %v209_v5 = vld [vmem:[#allocation5 + $0x28] sm:$0xff]  ;;  %s368_s26 = sshll.u32 %s201_s25, 4  ;;  %s907_s9 = scalar_lea.hbm %s954_s3, %s465_s4  ;;  %s909_s26 = int_to_ptr.vmem [resolvable:$true] %s368_s26 }
  0x57   : > { %v211_v6 = vld [vmem:[#allocation5 + $0x38] sm:$0xff]  ;;  %v468_v7 = vpack.c.bf16 %v206_v4, %v204_v2  ;;  %v208_v9 = vld [vmem:[#allocation5 + $0x20] sm:$0xff]  ;;  %v210_v10 = vld [vmem:[#allocation5 + $0x30] sm:$0xff]  ;;  %s354_s16 = scalar_lea.sflag [#allocation4], %s880_s30  ;;  %s647_s10 = scalar_lea.vmem %s909_s26, 256 }
  0x58   : > { %v470_v8 = vpack.c.bf16 %v211_v6, %v209_v5  ;;  %467 = vmatprep.subr.bf16.mxu0 %v466_v3  ;;  %v213_v11 = vld [vmem:[#allocation5 + $0x48] sm:$0xff]  ;;  %v215_v12 = vld [vmem:[#allocation5 + $0x58] sm:$0xff]  ;;  %v472_v13 = vpack.c.bf16 %v210_v10, %v208_v9  ;;  %v212_v15 = vld [vmem:[#allocation5 + $0x40] sm:$0xff]  ;;  %p648_p4 = scmp.ne.s32.totalorder %s909_s26, %s647_s10  ;;  %s723_s11 = smov [#allocation7]  }
  0x59   : > { %469 = vmatpush1.bf16.xpose.msra.mxu0 %v468_v7  ;;  %v474_v14 = vpack.c.bf16 %v215_v12, %v213_v11  ;;  %v214_v16 = vld [vmem:[#allocation5 + $0x50] sm:$0xff]  ;;  %v217_v17 = vld [vmem:[#allocation5 + $0x68] sm:$0xff]  ;;  %v219_v18 = vld [vmem:[#allocation5 + $0x78] sm:$0xff]  ;;  %s651_s27 = sshll.u32 %s723_s11, 4  ;;  %s652_s27 = int_to_ptr.vmem [resolvable:$false] %s651_s27 }
  0x5a   : > { %471 = vmatprep.subr.bf16.mxu0 %v470_v8  ;;  %v476_v19 = vpack.c.bf16 %v214_v16, %v212_v15  ;;  %v478_v20 = vpack.c.bf16 %v219_v18, %v217_v17  ;;  %v216_v21 = vld [vmem:[#allocation5 + $0x60] sm:$0xff]  ;;  %v218_v22 = vld [vmem:[#allocation5 + $0x70] sm:$0xff]  ;;  %v203_v23 = vld [vmem:[%s886_s7 + $0x8] sm:$0xff]  ;;  %p649_p6 = pnand %p648_p4, %p835_p12  ;;  %s653_s28 = scalar_lea.vmem %s652_s27, 512 }
  0x5b   : > { %v221_v24 = vld [vmem:[#allocation5 + $0x88] sm:$0xff]  ;;  %v223_v25 = vld [vmem:[#allocation5 + $0x98] sm:$0xff]  ;;  %344 = vmatprep.mubr.f32.mxu0 %v203_v23  ;;  %v480_v26 = vpack.c.bf16 %v218_v22, %v216_v21  ;;  %v220_v28 = vld [vmem:[#allocation5 + $0x80] sm:$0xff]  ;;  %p654_p10 = scmp.lt.s32.totalorder %s909_s26, %s652_s27  ;;  %p655_p13 = scmp.lt.s32.totalorder %s653_s28, %s647_s10 }
  0x5c   : > { %v482_v27 = vpack.c.bf16 %v223_v25, %v221_v24  ;;  %v222_v29 = vld [vmem:[#allocation5 + $0x90] sm:$0xff]  ;;  %v225_v30 = vld [vmem:[#allocation5 + $0xa8] sm:$0xff]  ;;  %v227_v31 = vld [vmem:[#allocation5 + $0xb8] sm:$0xff]  ;;  %p650_p8 = pneg %p649_p6 }
  0x5d   : > { %v484_v32 = vpack.c.bf16 %v222_v29, %v220_v28  ;;  %v486_v33 = vpack.c.bf16 %v227_v31, %v225_v30  ;;  %v224_v34 = vld [vmem:[#allocation5 + $0xa0] sm:$0xff]  ;;  %v226_v35 = vld [vmem:[#allocation5 + $0xb0] sm:$0xff]  ;;  %v229_v36 = vld [vmem:[#allocation5 + $0xc8] sm:$0xff]  ;;  %p656_p3 = por %p655_p13, %p654_p10 }
  0x5e   : > { %v231_v37 = vld [vmem:[#allocation5 + $0xd8] sm:$0xff]  ;;  %v488_v38 = vpack.c.bf16 %v226_v35, %v224_v34  ;;  %v228_v40 = vld [vmem:[#allocation5 + $0xc0] sm:$0xff]  ;;  %v230_v41 = vld [vmem:[#allocation5 + $0xd0] sm:$0xff]  ;;  %v270_v34 = vlaneseq }
  0x5f   : > { %v490_v39 = vpack.c.bf16 %v231_v37, %v229_v36  ;;  %v233_v42 = vld [vmem:[#allocation5 + $0xe8] sm:$0xff]  ;;  %v235_v43 = vld [vmem:[#allocation5 + $0xf8] sm:$0xff]  ;;  %v492_v44 = vpack.c.bf16 %v230_v41, %v228_v40  ;;  %v232_v46 = vld [vmem:[#allocation5 + $0xe0] sm:$0xff]  ;;  %p657_p7 = pnand %p656_p3, %p650_p8 }
  0x60   : > { %v494_v45 = vpack.c.bf16 %v235_v43, %v233_v42  ;;  %v234_v47 = vld [vmem:[#allocation5 + $0xf0] sm:$0xff]  ;;  %v237_v48 = vld [vmem:[#allocation5 + $0x108] sm:$0xff]  ;;  %v239_v49 = vld [vmem:[#allocation5 + $0x118] sm:$0xff]  ;;  %v271_v35 = vshrl.u32 %v270_v34, 7 }
  0x61   : > { %473 = vmatpush1.bf16.xpose.msra.mxu0 %v472_v13  ;;  %v496_v50 = vpack.c.bf16 %v234_v47, %v232_v46  ;;  %v498_v51 = vpack.c.bf16 %v239_v49, %v237_v48  ;;  %v236_v52 = vld [vmem:[#allocation5 + $0x100] sm:$0xff]  ;;  %v238_v53 = vld [vmem:[#allocation5 + $0x110] sm:$0xff]  ;;  %v241_v54 = vld [vmem:[#allocation5 + $0x128] sm:$0xff] }
  0x62   : > { %475 = vmatprep.subr.bf16.mxu0 %v474_v14  ;;  %v243_v55 = vld [vmem:[#allocation5 + $0x138] sm:$0xff]  ;;  %v500_v56 = vpack.c.bf16 %v238_v53, %v236_v52  ;;  %v240_v58 = vld [vmem:[#allocation5 + $0x120] sm:$0xff]  ;;  %v242_v59 = vld [vmem:[#allocation5 + $0x130] sm:$0xff]  ;;  %v272_v36 = vsub.s32 0, %v271_v35 }
  0x63   : > { %v502_v57 = vpack.c.bf16 %v243_v55, %v241_v54  ;;  %v245_v60 = vld [vmem:[#allocation5 + $0x148] sm:$0xff]  ;;  %v247_v61 = vld [vmem:[#allocation5 + $0x158] sm:$0xff]  ;;  %v504_v62 = vpack.c.bf16 %v242_v59, %v240_v58  ;;  %v244_v0 = vld [vmem:[#allocation5 + $0x140] sm:$0xff] }
  0x64   : > { %v506_v63 = vpack.c.bf16 %v247_v61, %v245_v60  ;;  %v246_v1 = vld [vmem:[#allocation5 + $0x150] sm:$0xff]  ;;  %v249_v2 = vld [vmem:[#allocation5 + $0x168] sm:$0xff]  ;;  %v251_v3 = vld [vmem:[#allocation5 + $0x178] sm:$0xff] }
  0x65   : > { %v508_v4 = vpack.c.bf16 %v246_v1, %v244_v0  ;;  %v510_v5 = vpack.c.bf16 %v251_v3, %v249_v2  ;;  %v248_v6 = vld [vmem:[#allocation5 + $0x160] sm:$0xff]  ;;  %v250_v7 = vld [vmem:[#allocation5 + $0x170] sm:$0xff]  ;;  %v253_v8 = vld [vmem:[#allocation5 + $0x188] sm:$0xff] }
  0x66   : > { %v255_v9 = vld [vmem:[#allocation5 + $0x198] sm:$0xff]  ;;  %v512_v10 = vpack.c.bf16 %v250_v7, %v248_v6  ;;  %v252_v12 = vld [vmem:[#allocation5 + $0x180] sm:$0xff]  ;;  %v254_v13 = vld [vmem:[#allocation5 + $0x190] sm:$0xff] }
  0x67   : > { %v514_v11 = vpack.c.bf16 %v255_v9, %v253_v8  ;;  %v257_v14 = vld [vmem:[#allocation5 + $0x1a8] sm:$0xff]  ;;  %v259_v15 = vld [vmem:[#allocation5 + $0x1b8] sm:$0xff]  ;;  %v516_v16 = vpack.c.bf16 %v254_v13, %v252_v12  ;;  %v256_v18 = vld [vmem:[#allocation5 + $0x1a0] sm:$0xff] }
  0x68   : > { %v518_v17 = vpack.c.bf16 %v259_v15, %v257_v14  ;;  %v263_v21 = vld [vmem:[#allocation5 + $0x1d8] sm:$0xff]  ;;  %v260_v24 = vld [vmem:[#allocation5 + $0x1c0] sm:$0xff]  ;;  %v262_v25 = vld [vmem:[#allocation5 + $0x1d0] sm:$0xff] }
  0x69   : > { %477 = vmatpush1.bf16.xpose.msra.mxu0 %v476_v19  ;;  %v258_v19 = vld [vmem:[#allocation5 + $0x1b0] sm:$0xff]  ;;  %v524_v28 = vpack.c.bf16 %v262_v25, %v260_v24  ;;  %v264_v30 = vld [vmem:[#allocation5 + $0x1e0] sm:$0xff] }
  0x6a   : > { %479 = vmatprep.subr.bf16.mxu0 %v478_v20  ;;  %v261_v20 = vld [vmem:[#allocation5 + $0x1c8] sm:$0xff]  ;;  %v520_v22 = vpack.c.bf16 %v258_v19, %v256_v18  ;;  %v266_v31 = vld [vmem:[#allocation5 + $0x1f0] sm:$0xff]  ;;  %v268_v37 = vld [vmem:[%s953_s2] sm:$0x3] }
  0x6b   : > { %v522_v23 = vpack.c.bf16 %v263_v21, %v261_v20 }
  0x71   : > { %481 = vmatpush1.bf16.xpose.msra.mxu0 %v480_v26  ;;  %v265_v26 = vld [vmem:[#allocation5 + $0x1e8] sm:$0xff] }
  0x72   : > { %483 = vmatprep.subr.bf16.mxu0 %v482_v27  ;;  %v267_v27 = vld [vmem:[#allocation5 + $0x1f8] sm:$0xff] }
  0x73   : > { %v526_v29 = vpack.c.bf16 %v267_v27, %v265_v26 }
  0x79   : > { %485 = vmatpush1.bf16.xpose.msra.mxu0 %v484_v32  ;;  %v528_v32 = vpack.c.bf16 %v266_v31, %v264_v30 }
  0x7a   : > { %487 = vmatprep.subr.bf16.mxu0 %v486_v33  ;;  %v202_v33 = vld [vmem:[%s886_s7] sm:$0xff] }
  0x81   : > { %489 = vmatpush1.bf16.xpose.msra.mxu0 %v488_v38  ;;  %v276_v38 = vsub.s32 1, %v271_v35 }
  0x82   : > { %491 = vmatprep.subr.bf16.mxu0 %v490_v39  ;;  %v273_v39 = vrot.slane %v268_v37, %v272_v36 }
  0x83   : > { %v277_v40 = vrot.slane %v268_v37, %v276_v38 }
  0x89   : > { %493 = vmatpush1.bf16.xpose.msra.mxu0 %v492_v44 }
  0x8a   : > { %495 = vmatprep.subr.bf16.mxu0 %v494_v45 }
  0x91   : > { %497 = vmatpush1.bf16.xpose.msra.mxu0 %v496_v50 }
  0x92   : > { %499 = vmatprep.subr.bf16.mxu0 %v498_v51 }
  0x99   : > { %501 = vmatpush1.bf16.xpose.msra.mxu0 %v500_v56 }
  0x9a   : > { %503 = vmatprep.subr.bf16.mxu0 %v502_v57 }
  0xa1   : > { %505 = vmatpush1.bf16.xpose.msra.mxu0 %v504_v62 }
  0xa2   : > { %507 = vmatprep.subr.bf16.mxu0 %v506_v63 }
  0xa9   : > { %509 = vmatpush1.bf16.xpose.msra.mxu0 %v508_v4 }
  0xaa   : > { %511 = vmatprep.subr.bf16.mxu0 %v510_v5 }
  0xb1   : > { %513 = vmatpush1.bf16.xpose.msra.mxu0 %v512_v10 }
  0xb2   : > { %515 = vmatprep.subr.bf16.mxu0 %v514_v11 }
  0xb9   : > { %517 = vmatpush1.bf16.xpose.msra.mxu0 %v516_v16 }
  0xba   : > { %519 = vmatprep.subr.bf16.mxu0 %v518_v17 }
  0xc1   : > { %521 = vmatpush1.bf16.xpose.msra.mxu0 %v520_v22 }
  0xc2   : > { %523 = vmatprep.subr.bf16.mxu0 %v522_v23 }
  0xc9   : > { %525 = vmatpush1.bf16.xpose.msra.mxu0 %v524_v28 }
  0xca   : > { %527 = vmatprep.subr.bf16.mxu0 %v526_v29 }
  0xd1   : > { %529 = vmatpush1.bf16.xpose.msra.mxu0 %v528_v32 }
  0xd8   : > { %345 = vmatmul.mubr.f32.vlgmr.msra.gmra.mrb[0].mxu0 %v202_v33 }
 0x1ab   : > { %v346_v41 = vpop.f32.mrb[0].mxu0 }
 0x1ac   : > { %v347_v42 = vadd.f32 %v346_v41, %v273_v39  ;;  %v348_v43 = vpop.f32.mrb[1].mxu0 }
 0x1ad   : > { %v349_v44 = vadd.f32 %v348_v43, %v277_v40 }
 0x1ae   : > { %351 = vst [vmem:[%s201_s25] sm:$0xff] %v347_v42 }
 0x1af   : > { %352 = vst [vmem:[%s201_s25 + $0x8] sm:$0xff] %v349_v44 }
 0x1b0   : > { %660 = shalt.err (!%p657_p7)
}
 0x1b1   : > { %s661_s29 = scalar_lea.hbm %s907_s9, 256  ;;  %s665_s22 = scalar_lea.hbm %s954_s3, 512 }
 0x1b2   : > { %p662_p9 = scmp.ne.s32.totalorder %s907_s9, %s661_s29  ;;  %p666_p0 = scmp.lt.u32.totalorder %s907_s9, %s954_s3 }
 0x1b3   : > { %p667_p11 = scmp.lt.u32.totalorder %s665_s22, %s661_s29  ;;  %p669_p4 = scmp.lt.u32.totalorder %s661_s29, %s907_s9 }
 0x1b4   : > { %p663_p2 = pnand %p662_p9, %p835_p12 }
 0x1b5   : > { %p668_p1 = por %p667_p11, %p666_p0 }
 0x1b6   : > { %p664_p5 = pneg %p663_p2 }
 0x1b7   : > { %p670_p6 = por %p669_p4, %p668_p1 }
 0x1b9   : > { %p671_p8 = pnand %p670_p6, %p664_p5 }
 0x1bb   : > { %674 = shalt.err (!%p671_p8)
}
 0x1bc   : > { %536 = dma.vmem_to_hbm [thread:$0]  (%p835_p12), %s909_s26, 256, %s907_s9, %s354_s16  }
 0x1bd PF: > { %s380_s18 = sand.u32 1, %s705_s12   ;;  %p969_p10 = scmp.ne.s32.totalorder %s959_s19, 0 }
 0x1be   : > { %p970_p13 = scmp.ge.s32.totalorder %s717_s15, 2  ;;  %s381_s20 = scalar_lea.sflag [#allocation4], %s380_s18 }
 0x1c0   : > { %p547_p3 = pnand %p970_p13, %p969_p10 }
 0x1c2   : > { %700 = dma.done.wait (!%p547_p3), %s381_s20, 256  }
 0x1c3   : > { %702 = vsyncadd (!%p547_p3), %s381_s20, 4294967040  ;;  %p17_p7 = scmp.ge.s32.totalorder %s800_s24, 4   ;;  %s971_s12 = smov %s709_s13 }
 0x1c4   : > { %s972_s13 = smov %s713_s14  ;;  %s973_s14 = smov %s831_s17 }
 0x1c5   : > { %s974_s15 = smov %s800_s24  ;;  %19 = sbr.rel (!%p17_p7) target bundleno = 6 (0x6), region = 81 }
 0x1cc   :  { %386 = vsyncpa [#allocation3], 1 }
 0x1cd   :  { %388 = vsyncpa [#allocation3 + $0x1], 1 }
 0x1ce   :  { %389 = vsyncpa [#allocation6], 1 }
 0x1cf   :  { %390 = vsyncpa [#allocation4], 1 }
 0x1d0   :  { %392 = vsyncpa [#allocation4 + $0x1], 1 }

</bundles_post_ra>
